<compile_context>
chip_gen: v6e
topology: v6e:2x2x1
jax: 0.10.0
libtpu: 0.0.40
codegen_flags: <defaults>
</compile_context>

<pallas_src>
import functools
import math

import jax
import jax.numpy as jnp
from jax.experimental import pallas as pl
from jax.experimental.pallas import tpu as pltpu

_VMEM = pltpu.MemorySpace.VMEM
_SMEM = pltpu.MemorySpace.SMEM

_VMEM_LIMIT = 48 * 1024 * 1024  # explicit, safe on v5e/v6e (128 MiB) and v7x (64 MiB)


# ---------------------------------------------------------------------------
# Kernel 1: fused QKV projection   qkv = x @ [wq|wk|wv] + [bq|bk|bv]   (row-tiled)
# ---------------------------------------------------------------------------
def qkv_proj_kernel(x_ref, w_ref, b_ref, o_ref):
    o_ref[...] = (
        jnp.dot(x_ref[...], w_ref[...], preferred_element_type=jnp.float32)
        + b_ref[...]
    )


def run_qkv_proj(x, w_qkv, b_qkv, *, block_rows=128):
    n, f = x.shape
    d3 = w_qkv.shape[1]
    assert n % block_rows == 0
    return pl.pallas_call(
        qkv_proj_kernel,
        out_shape=jax.ShapeDtypeStruct((n, d3), jnp.float32),
        grid_spec=pltpu.PrefetchScalarGridSpec(
            num_scalar_prefetch=0,
            grid=(n // block_rows,),
            in_specs=[
                pl.BlockSpec((block_rows, f), lambda i: (i, 0)),
                pl.BlockSpec((f, d3), lambda i: (0, 0)),
                pl.BlockSpec((1, d3), lambda i: (0, 0)),
            ],
            out_specs=pl.BlockSpec((block_rows, d3), lambda i: (i, 0)),
        ),
        compiler_params=pltpu.CompilerParams(
            dimension_semantics=("parallel",),
            vmem_limit_bytes=_VMEM_LIMIT,
        ),
    )(x, w_qkv, b_qkv)


# ---------------------------------------------------------------------------
# Kernel 2: flash-style edge-biased multi-head attention + residual
#   q/k/v/x layout: (heads, N, head_dim); grid = (N//Tq, N//Tk)
#   rel_bias (REL_NUM, heads) sits in SMEM; bias for the (Tq, Tk) tile is built
#   from the int32 edge_types tile with REL_NUM compare/selects per head (VPU).
# ---------------------------------------------------------------------------
def attn_kernel(rel_ref, q_ref, k_ref, v_ref, x_ref, et_ref, o_ref,
                m_sc, l_sc, acc_sc, *, heads, rel_num):
    kj = pl.program_id(1)

    @pl.when(kj == 0)
    def _init():
        m_sc[...] = jnp.full(m_sc.shape, -jnp.inf, jnp.float32)
        l_sc[...] = jnp.zeros(l_sc.shape, jnp.float32)
        acc_sc[...] = jnp.zeros(acc_sc.shape, jnp.float32)

    q = q_ref[...]                              # (heads, Tq, hd) -- scale pre-folded
    k = k_ref[...]                              # (heads, Tk, hd)
    s = jnp.einsum("hqd,hkd->hqk", q, k,
                   preferred_element_type=jnp.float32)      # (heads, Tq, Tk)

    # per-head relation bias via compare/select over the tiny relation table
    # TODO(synk): for large relation vocabularies, gather the bias outside instead
    # of unrolling over rel_num.
    et = et_ref[...]                            # (Tq, Tk) int32
    bias_per_head = []
    for hh in range(heads):                     # static unroll (heads is small)
        b = jnp.zeros(et.shape, jnp.float32)
        for r in range(rel_num):                # static unroll (rel_num is small)
            b = jnp.where(et == r, rel_ref[r, hh], b)
        bias_per_head.append(b)
    s = s + jnp.stack(bias_per_head, axis=0)    # (heads, Tq, Tk)

    # online softmax update
    m_prev = m_sc[...]
    m_new = jnp.maximum(m_prev, jnp.max(s, axis=-1, keepdims=True))
    alpha = jnp.exp(m_prev - m_new)
    p = jnp.exp(s - m_new)
    l_sc[...] = alpha * l_sc[...] + jnp.sum(p, axis=-1, keepdims=True)
    acc_sc[...] = alpha * acc_sc[...] + jnp.einsum(
        "hqk,hkd->hqd", p, v_ref[...], preferred_element_type=jnp.float32)
    m_sc[...] = m_new

    @pl.when(kj == pl.num_programs(1) - 1)
    def _finalize():
        inv_l = pl.reciprocal(l_sc[...], approx=True)
        # residual add (requires in_dim == heads * head_dim), single dense store
        o_ref[...] = acc_sc[...] * inv_l + x_ref[...]


def run_attention(qh, kh, vh, xh, edge_types, rel_bias, *, tq=128, tk=128):
    heads, n, hd = qh.shape
    rel_num = rel_bias.shape[0]
    assert n % tq == 0 and n % tk == 0
    kern = functools.partial(attn_kernel, heads=heads, rel_num=rel_num)
    return pl.pallas_call(
        kern,
        out_shape=jax.ShapeDtypeStruct((heads, n, hd), jnp.float32),
        grid_spec=pltpu.PrefetchScalarGridSpec(
            num_scalar_prefetch=0,
            grid=(n // tq, n // tk),
            in_specs=[
                pl.BlockSpec(memory_space=_SMEM),                          # rel_bias
                pl.BlockSpec((heads, tq, hd), lambda qi, kj: (0, qi, 0)),  # q
                pl.BlockSpec((heads, tk, hd), lambda qi, kj: (0, kj, 0)),  # k
                pl.BlockSpec((heads, tk, hd), lambda qi, kj: (0, kj, 0)),  # v
                pl.BlockSpec((heads, tq, hd), lambda qi, kj: (0, qi, 0)),  # x (residual)
                pl.BlockSpec((tq, tk), lambda qi, kj: (qi, kj)),           # edge_types
            ],
            out_specs=pl.BlockSpec((heads, tq, hd), lambda qi, kj: (0, qi, 0)),
            scratch_shapes=[
                pltpu.VMEM((heads, tq, 1), jnp.float32),    # m
                pltpu.VMEM((heads, tq, 1), jnp.float32),    # l
                pltpu.VMEM((heads, tq, hd), jnp.float32),   # acc
            ],
        ),
        compiler_params=pltpu.CompilerParams(
            dimension_semantics=("parallel", "arbitrary"),
            vmem_limit_bytes=_VMEM_LIMIT,
        ),
    )(rel_bias, qh, kh, vh, xh, edge_types)


# ---------------------------------------------------------------------------
# Kernel 3: output head  logits = h @ w_out + b ; relu((centrality*gamma+beta)*logits)
#   (F -> 1) contraction as VPU multiply + lane reduce; row-tiled.
# ---------------------------------------------------------------------------
def output_head_kernel(h_ref, w_ref, cent_ref, scal_ref, o_ref):
    logits = jnp.sum(h_ref[...] * w_ref[...], axis=-1, keepdims=True) + scal_ref[0]
    scale = cent_ref[...] * scal_ref[1] + scal_ref[2]
    o_ref[...] = jnp.maximum(scale * logits, 0.0)


def run_output_head(h, w_out, centrality_col, b_out, gamma, beta, *, block_rows=128):
    n, f = h.shape
    assert n % block_rows == 0
    scalars = jnp.concatenate(
        [b_out.reshape(-1), gamma.reshape(-1), beta.reshape(-1)]).astype(jnp.float32)
    w_row = w_out.reshape(1, f)
    return pl.pallas_call(
        output_head_kernel,
        out_shape=jax.ShapeDtypeStruct((n, 1), jnp.float32),
        grid_spec=pltpu.PrefetchScalarGridSpec(
            num_scalar_prefetch=0,
            grid=(n // block_rows,),
            in_specs=[
                pl.BlockSpec((block_rows, f), lambda i: (i, 0)),
                pl.BlockSpec((1, f), lambda i: (0, 0)),
                pl.BlockSpec((block_rows, 1), lambda i: (i, 0)),
                pl.BlockSpec(memory_space=_SMEM),
            ],
            out_specs=pl.BlockSpec((block_rows, 1), lambda i: (i, 0)),
        ),
        compiler_params=pltpu.CompilerParams(
            dimension_semantics=("parallel",),
            vmem_limit_bytes=_VMEM_LIMIT,
        ),
    )(h, w_row, centrality_col, scalars)


# ---------------------------------------------------------------------------
# Module wrapper (plain-JAX glue: parameter setup / fusion, layout reshapes)
# ---------------------------------------------------------------------------
def init_params(key, num_layers, rel_num, pred_dim, in_dim, num_hidden, heads):
    keys = jax.random.split(key, 4 * num_layers + 3)
    ki = iter(range(len(keys)))
    layers = []
    f_in = in_dim
    for l in range(num_layers):
        h_l = heads[l]
        out_dim = num_hidden * h_l
        layers.append(dict(
            wq=0.1 * jax.random.normal(keys[next(ki)], (f_in, out_dim), jnp.float32),
            bq=jnp.zeros((1, out_dim), jnp.float32),
            wk=0.1 * jax.random.normal(keys[next(ki)], (f_in, out_dim), jnp.float32),
            bk=jnp.zeros((1, out_dim), jnp.float32),
            wv=0.1 * jax.random.normal(keys[next(ki)], (f_in, out_dim), jnp.float32),
            bv=jnp.zeros((1, out_dim), jnp.float32),
            we=0.1 * jax.random.normal(keys[next(ki)], (pred_dim, h_l), jnp.float32),
            be=jnp.zeros((1, h_l), jnp.float32),
        ))
        f_in = out_dim
    params = dict(
        layers=layers,
        rel_emb=0.1 * jax.random.normal(keys[next(ki)], (rel_num, pred_dim), jnp.float32),
        w_out=0.1 * jax.random.normal(keys[next(ki)],
                                      (num_hidden * heads[-2], 1), jnp.float32),
        b_out=jnp.zeros((1, 1), jnp.float32),
        gamma=jnp.ones((1, 1), jnp.float32),    # nn.init.ones_
        beta=jnp.zeros((1, 1), jnp.float32),    # nn.init.zeros_
        heads=heads,
        head_dim=num_hidden,
    )
    return params


def gtran_rel_forward(params, inputs, edge_types, centrality):
    n = inputs.shape[0]
    head_dim = params["head_dim"]
    h = inputs
    for l, lp in enumerate(params["layers"]):
        heads = params["heads"][l]
        d = heads * head_dim
        assert h.shape[1] == d, "residual requires in_dim == heads * head_dim"

        # Fold the 1/sqrt(head_dim) score scale into the Q projection parameters
        # and fuse the three projections into one matmul.
        scale = 1.0 / math.sqrt(head_dim)
        w_qkv = jnp.concatenate([lp["wq"] * scale, lp["wk"], lp["wv"]], axis=1)
        b_qkv = jnp.concatenate([lp["bq"] * scale, lp["bk"], lp["bv"]], axis=1)

        # Tiny per-relation bias table (REL_NUM, heads) = rel_emb @ we + be.
        # Replaces the (N*N, P) gather + (N*N, P)@(P, H) matmul of the original.
        rel_bias = params["rel_emb"] @ lp["we"] + lp["be"]

        qkv = run_qkv_proj(h, w_qkv, b_qkv)                  # (N, 3*D)   Pallas
        q, k, v = jnp.split(qkv, 3, axis=1)

        def to_heads(a):                                     # (N, D) -> (heads, N, hd)
            return a.reshape(n, heads, head_dim).transpose(1, 0, 2)

        oh = run_attention(to_heads(q), to_heads(k), to_heads(v), to_heads(h),
                           edge_types, rel_bias)             # (heads, N, hd) Pallas
        h = oh.transpose(1, 0, 2).reshape(n, d)              # concat heads

    logits = run_output_head(
        h, params["w_out"], centrality[:, None].astype(jnp.float32),
        params["b_out"], params["gamma"], params["beta"])
    return logits
    # TODO(synk): feat_drop / attn_drop / batch_norm are eval-mode no-ops, omitted.


# ---------------------------------------------------------------------------
# Pure-JAX reference for verification
# ---------------------------------------------------------------------------
def reference_forward(params, inputs, edge_types, centrality):
    head_dim = params["head_dim"]
    ef = params["rel_emb"][edge_types]                      # (N, N, P)
    h = inputs
    for l, lp in enumerate(params["layers"]):
        heads = params["heads"][l]
        q = h @ lp["wq"] + lp["bq"]
        k = h @ lp["wk"] + lp["bk"]
        v = h @ lp["wv"] + lp["bv"]
        eb = jnp.einsum("ijp,ph->ijh", ef, lp["we"]) + lp["be"]
        outs = []
        for hh in range(heads):
            sl = slice(hh * head_dim, (hh + 1) * head_dim)
            s = (q[:, sl] @ k[:, sl].T) / math.sqrt(head_dim) + eb[:, :, hh]
            p = jax.nn.softmax(s, axis=-1)
            outs.append(p @ v[:, sl] + h[:, sl])
        h = jnp.concatenate(outs, axis=-1)
    logits = h @ params["w_out"] + params["b_out"]
    scale = centrality[:, None] * params["gamma"][0, 0] + params["beta"][0, 0]
    return jnp.maximum(scale * logits, 0.0)


if __name__ == "__main__":
    # Small, self-consistent configuration (tile-friendly: N multiple of 128).
    N = 256
    NUM_HIDDEN = 64                   # head_dim
    HEADS = [2, 2]                    # heads[-1] == heads[-2]
    IN_DIM = NUM_HIDDEN * HEADS[0]    # residual requires in_dim == heads*head_dim
    NUM_LAYERS = 2
    PRED_DIM = 8
    REL_NUM = 5

    key = jax.random.PRNGKey(0)
    kp, kx, ke, kc = jax.random.split(key, 4)

    params = init_params(kp, NUM_LAYERS, REL_NUM, PRED_DIM, IN_DIM, NUM_HIDDEN, HEADS)

    inputs = jax.random.normal(kx, (N, IN_DIM), jnp.float32)
    edge_types = jax.random.randint(ke, (N, N), 0, REL_NUM, dtype=jnp.int32)
    centrality = jax.random.uniform(kc, (N,), jnp.float32)

    out = gtran_rel_forward(params, inputs, edge_types, centrality)
    out = jax.block_until_ready(out)

    ref = reference_forward(params, inputs, edge_types, centrality)
    assert out.shape == (N, 1), out.shape
    assert bool(jnp.all(jnp.isfinite(out)))
    assert bool(jnp.allclose(out, ref, atol=1e-2, rtol=1e-2)), (
        float(jnp.max(jnp.abs(out - ref))))

    print("KERNEL_OK")
</pallas_src>

<mosaic_0001>
module attributes {stable_mosaic.version = 11 : i64} {
  func.func @qkv_proj_kernel(%arg0: i32, %arg1: memref<128x128xf32, #tpu.memory_space<vmem>>, %arg2: memref<128x384xf32, #tpu.memory_space<vmem>>, %arg3: memref<1x384xf32, #tpu.memory_space<vmem>>, %arg4: memref<128x384xf32, #tpu.memory_space<vmem>>) attributes {dimension_semantics = [#tpu.dimension_semantics<parallel>], iteration_bounds = array<i64: 2>, scalar_prefetch = 0 : i64, scratch_operands = 0 : i64, tpu.core_type = #tpu.core_type<tc>, window_params = [{transform_indices = @transform_0, window_bounds = array<i64: 128, 128>}, {pipeline_mode = #tpu.pipeline_mode<synchronous>, transform_indices = @transform_1, window_bounds = array<i64: 128, 384>}, {pipeline_mode = #tpu.pipeline_mode<synchronous>, transform_indices = @transform_2, window_bounds = array<i64: 1, 384>}, {transform_indices = @transform_3, window_bounds = array<i64: 128, 384>}]} {
    %c0 = arith.constant 0 : index
    %c0_0 = arith.constant 0 : index
    %0 = vector.load %arg1[%c0, %c0_0] : memref<128x128xf32, #tpu.memory_space<vmem>>, vector<128x128xf32>
    %c0_1 = arith.constant 0 : index
    %c0_2 = arith.constant 0 : index
    %1 = vector.load %arg2[%c0_1, %c0_2] : memref<128x384xf32, #tpu.memory_space<vmem>>, vector<128x384xf32>
    %cst = arith.constant dense<0.000000e+00> : vector<128x384xf32>
    %2 = tpu.matmul %0, %1, %cst {dimension_numbers = #tpu.dot_dimension_numbers<[1], [0], [0], [1], [0, 0, 1, 1], [], []>} : vector<128x128xf32>, vector<128x384xf32>, vector<128x384xf32> -> vector<128x384xf32>
    %c0_3 = arith.constant 0 : index
    %c0_4 = arith.constant 0 : index
    %3 = vector.load %arg3[%c0_3, %c0_4] : memref<1x384xf32, #tpu.memory_space<vmem>>, vector<1x384xf32>
    %4 = vector.broadcast %3 : vector<1x384xf32> to vector<128x384xf32>
    %5 = arith.addf %2, %4 : vector<128x384xf32>
    %c0_5 = arith.constant 0 : index
    %c0_6 = arith.constant 0 : index
    %6 = vector.load %arg4[%c0_5, %c0_6] : memref<128x384xf32, #tpu.memory_space<vmem>>, vector<128x384xf32>
    tpu.vector_store %arg4[%c0_5, %c0_6], %5 {strides = array<i32>} : memref<128x384xf32, #tpu.memory_space<vmem>>, vector<128x384xf32>,
    return
  }
  func.func @transform_0(%arg0: i32) -> (i32, i32) {
    %c0_i32 = arith.constant 0 : i32
    %c0_i32_0 = arith.constant 0 : i32
    return %arg0, %c0_i32 : i32, i32
  }
  func.func @transform_1(%arg0: i32) -> (i32, i32) {
    %c0_i32 = arith.constant 0 : i32
    %c0_i32_0 = arith.constant 0 : i32
    %c0_i32_1 = arith.constant 0 : i32
    return %c0_i32, %c0_i32_0 : i32, i32
  }
  func.func @transform_2(%arg0: i32) -> (i32, i32) {
    %c0_i32 = arith.constant 0 : i32
    %c0_i32_0 = arith.constant 0 : i32
    %c0_i32_1 = arith.constant 0 : i32
    return %c0_i32, %c0_i32_0 : i32, i32
  }
  func.func @transform_3(%arg0: i32) -> (i32, i32) {
    %c0_i32 = arith.constant 0 : i32
    %c0_i32_0 = arith.constant 0 : i32
    return %arg0, %c0_i32 : i32, i32
  }
}

</mosaic_0001>

<bundles_post_ra>
// kernel: tpu_custom_call.1
= control target key start
LH: loop header
LB: loop body
LE: loop exit
PB: predicated region body
PF: predicated region fallthrough
CT: control target
= control target key end

     0   :  { %8 = vsyncpa [#allocation3], 0  ;;  %s1383_s0 = inlined_call_operand.hbm [shape: f32[256,128], index: 0, kind: input, shape index: {}]   ;;  %s1384_s1 = inlined_call_operand.hbm [shape: f32[128,384], index: 1, kind: input, shape index: {}]   ;;  %s1385_s2 = inlined_call_operand.vmem [shape: f32[1,384], index: 2, kind: input, shape index: {}]   ;;  %s1386_s3 = inlined_call_operand.hbm [shape: f32[256,384], index: 3, kind: output, shape index: {}]  }
   0x1   :  { %10 = vsyncpa [#allocation3 + $0x1], 0 }
   0x2   :  { %11 = vsyncpa [#allocation6], 0 }
   0x3   :  { %12 = vsyncpa [#allocation4], 0 }
   0x4   :  { %14 = vsyncpa [#allocation4 + $0x1], 0  ;;  %s1063_s12 = smov 0   ;;  %s1065_s13 = smov 0  }
   0x5   :  { %s1067_s14 = smov 0   ;;  %s1069_s15 = smov 0  }
   0x6 LB: > { %s1084_s16 = sadd.s32 4294967295, %s1031_s15   ;;  %s739_s17 = sadd.s32 4294967294, %s1031_s15   ;;  %s1031_s15 = sphi %s1069_s15, %s1408_s15   ;;  %s1027_s14 = sphi %s1067_s14, %s1407_s14   ;;  %s1023_s13 = sphi %s1065_s13, %s1406_s13   ;;  %s1019_s12 = sphi %s1063_s12, %s1405_s12  }
   0x7   : > { %p40_p0 = scmp.ne.s32.totalorder %s1023_s13, %s1019_s12  ;;  %p1387_p1 = scmp.eq.s32.totalorder %s1084_s16, 0 }
   0x8   : > { %p112_p3 = scmp.eq.s32.totalorder %s739_s17, 1  ;;  %p740_p5 = scmp.ge.s32.totalorder %s1031_s15, 1 }
   0x9   : > { %p1093_p4 = por %p1387_p1, %p40_p0  ;;  %p119_p7 = scmp.lt.s32.totalorder %s1031_s15, 3 }
   0xa   : > { %p1098_p6 = por %p112_p3, %p40_p0  ;;  %s1033_s21 = smov [#allocation5]  }
   0xb   : > { %s1391_s18 = scalar_select %p1093_p4, 1, 0 }
   0xc   : > { %s1392_s19 = scalar_select %p1098_p6, 1, 0 }
   0xd   : > { %p1103_p8 = pnand %p740_p5, %p119_p7  ;;  %s131_s22 = sshll.u32 %s1033_s21, 4  ;;  %s132_s22 = int_to_ptr.vmem [resolvable:$true] %s131_s22 }
   0xe   : > { %s1117_s24 = sadd.s32 1, %s1031_s15   ;;  %s27_s25 = sadd.s32 1, %s1027_s14 }
   0xf   : > { %s1393_s20 = scalar_select %p1103_p8, 1, 0 }
  0x10   : > { %p853_p9 = pneg %p1103_p8  ;;  %s24_s26 = ssub.s32 %s1031_s15, %s1117_s24 }
  0x11   : > { %s920_s27 = scalar_lea.vmem %s132_s22, 6144  ;;  %p928_p5 = scmp.lt.s32.totalorder %s132_s22, %s132_s22 }
  0x12   : > { %p1112_p11 = pnand %p853_p9, %p1387_p1  ;;  %p921_p13 = scmp.ne.s32.totalorder %s132_s22, %s920_s27 }
  0x13   : > { %p929_p7 = scmp.lt.s32.totalorder %s920_s27, %s920_s27 }
  0x14   : > { %p911_p12 = pneg %p1112_p11 }
  0x15   : > { %p930_p10 = por %p929_p7, %p928_p5 }
  0x16   : > { %p923_p0 = pnand %p921_p13, %p911_p12 }
  0x18   : > { %p924_p3 = pneg %p923_p0 }
  0x1a   : > { %p931_p2 = pnand %p930_p10, %p924_p3 }
  0x1c   : > { %934 = shalt.err (!%p931_p2)
}
  0x1d   : > { %s1034_s28 = smov 384   ;;  %s1035_s29 = smov 24  }
  0x1e   : > { %856 = dma.hbm_to_vmem [thread:$0]  (!%p1112_p11), %s1384_s1, 6144, %s132_s22, [#allocation6], %s1034_s28, %s1034_s28, %s1035_s29  }
  0x1f   : > { %p25_p9 = scmp.eq.s32.totalorder %s24_s26, 0  ;;  %p34_p12 = scmp.ne.s32.totalorder %s1027_s14, %s1023_s13 }
  0x20   : > { %p35_p10 = scmp.eq.s32.totalorder %s1031_s15, 0  ;;  %p866_p2 = scmp.lt.s32.totalorder %s1031_s15, 2 }
  0x21   : > { %s1134_s5 = scalar_select %p25_p9, %s1027_s14, %s27_s25  }
  0x22   : > { %p36_p13 = por %p35_p10, %p34_p12  ;;  %p1395_p0 = scmp.eq.s32.totalorder %s1084_s16, 1 }
  0x23   : > { %s148_s7 = sand.u32 1, %s1027_s14   ;;  %s754_s8 = sshll.u32 %s1031_s15, 11 }
  0x24   : > { %p1138_p3 = por %p1395_p0, %p34_p12  ;;  %s743_s9 = sshll.u32 %s148_s7, 7 }
  0x25   : > { %s1147_s17 = scalar_lea.hbm %s1383_s0, %s754_s8  ;;  %s152_s21 = scalar_lea.vmem [#allocation2], %s743_s9 }
  0x26   : > { %s1396_s6 = scalar_select %p1138_p3, 1, 0 }
  0x27   : > { %s159_s22 = sshll.u32 %s152_s21, 4  ;;  %p1149_p11 = pnand %p866_p2, %p36_p13  ;;  %s1153_s22 = int_to_ptr.vmem [resolvable:$true] %s159_s22 }
  0x28   : > { %s1155_s25 = scalar_lea.sflag [#allocation3], %s148_s7  ;;  %s935_s26 = scalar_lea.hbm %s1147_s17, 2048 }
  0x29   : > { %p936_p5 = scmp.ne.s32.totalorder %s1147_s17, %s935_s26  ;;  %p937_p7 = pneg %p1149_p11 }
  0x2a   : > { %s940_s29 = scalar_lea.hbm %s1383_s0, 4096  ;;  %p941_p10 = scmp.lt.s32.totalorder %s1147_s17, %s1383_s0 }
  0x2b   : > { %p938_p9 = pnand %p937_p7, %p936_p5  ;;  %p942_p2 = scmp.lt.s32.totalorder %s940_s29, %s935_s26 }
  0x2d   : > { %p939_p12 = pneg %p938_p9  ;;  %p943_p13 = por %p942_p2, %p941_p10 }
  0x2f   : > { %p944_p0 = pnand %p943_p13, %p939_p12 }
  0x31   : > { %947 = shalt.err (!%p944_p0)
}
  0x32   : > { %s948_s7 = scalar_lea.vmem %s1153_s22, 2048  ;;  %s1036_s8 = smov [#allocation2]  }
  0x33   : > { %p949_p1 = scmp.ne.s32.totalorder %s1153_s22, %s948_s7  ;;  %s953_s9 = sshll.u32 %s1036_s8, 4  ;;  %s954_s9 = int_to_ptr.vmem [resolvable:$false] %s953_s9 }
  0x34   : > { %s955_s10 = scalar_lea.vmem %s954_s9, 4096  ;;  %p956_p9 = scmp.lt.s32.totalorder %s1153_s22, %s954_s9 }
  0x35   : > { %p951_p6 = pnand %p949_p1, %p937_p7  ;;  %p957_p3 = scmp.lt.s32.totalorder %s955_s10, %s948_s7 }
  0x37   : > { %p952_p5 = pneg %p951_p6  ;;  %p958_p4 = por %p957_p3, %p956_p9 }
  0x39   : > { %p959_p8 = pnand %p958_p4, %p952_p5 }
  0x3b   : > { %962 = shalt.err (!%p959_p8)
}
  0x3c   : > { %s1037_s11 = smov 128   ;;  %s1038_s21 = smov 8  }
  0x3d   : > { %860 = dma.hbm_to_vmem [thread:$0]  (!%p1149_p11), %s1147_s17, 2048, %s1153_s22, %s1155_s25, %s1037_s11, %s1037_s11, %s1038_s21  }
  0x3e   : > { %p1398_p1 = scmp.ne.s32.totalorder %s1393_s20, 0 }
  0x3f   : > { %s1179_s26 = sand.u32 (!%p1398_p1), 1, %s1023_s13   ;;  %p1399_p4 = scmp.ne.s32.totalorder (!%p1398_p1), %s1391_s18, 0 }
  0x40   : > { %171 = sbr.rel (%p1398_p1) target bundleno = 377 (0x179), region = 32  ;;  %s747_s27 = sshll.u32 (!%p1398_p1), %s1179_s26, 7 }
  0x41   : > { %s174_s28 = scalar_lea.sflag (!%p1398_p1), [#allocation3], %s1179_s26  ;;  %s1183_s29 = scalar_lea.vmem (!%p1398_p1), [#allocation2], %s747_s27 }
  0x45   : > { %1006 = dma.done.wait (%p1399_p4), %s174_s28, 2048  }
  0x46   : > { %1008 = vsyncadd (%p1399_p4), %s174_s28, 4294965248  ;;  %p1400_p6 = scmp.eq.s32.totalorder %s1084_s16, 0 }
  0x48   : > { %1010 = dma.done.wait (%p1400_p6), [#allocation6], 6144   ;;  %p1401_p8 = pmov %p1400_p6 }
  0x49   : > { %v1039_v0 = vmov 0.0   ;;  %v268_v1 = vld [vmem:[#allocation5 + $0x170] sm:$0xff]  ;;  %v267_v2 = vld [vmem:[#allocation5 + $0x168] sm:$0xff]  ;;  %v265_v3 = vld [vmem:[#allocation5 + $0x158] sm:$0xff]  ;;  %s843_s17 = smul.u32 384, %s1179_s26  ;;  %p1402_p11 = scmp.ne.s32.totalorder %s1396_s6, 0 }
  0x4a   : > { %1012 = vsyncadd (%p1401_p8), [#allocation6], 4294961152  ;;  %351 = vmatprep.mubr.f32.mxu0 %v1039_v0  ;;  %287 = vmatprep.subr.mxu0 %v268_v1  ;;  %v264_v4 = vld [vmem:[#allocation5 + $0x150] sm:$0xff]  ;;  %v262_v5 = vld [vmem:[#allocation5 + $0x140] sm:$0xff]  ;;  %s844_s23 = smul.u32 6144, %s1084_s16  ;;  %s642_s16 = scalar_lea.sflag [#allocation4], %s1179_s26 }
  0x4b   : > { %288 = vmatpush1.msra.mxu0 %v267_v2  ;;  %v261_v6 = vld [vmem:[#allocation5 + $0x138] sm:$0xff]  ;;  %v259_v7 = vld [vmem:[#allocation5 + $0x128] sm:$0xff]  ;;  %v258_v8 = vld [vmem:[#allocation5 + $0x120] sm:$0xff]  ;;  %v272_v2 = vlaneseq  ;;  %s1234_s22 = scalar_lea.vmem [#allocation7], %s843_s17  ;;  %s1040_s9 = smov [#allocation7]  }
  0x4c   : > { %289 = vmatprep.subr.mxu0 %v265_v3  ;;  %v256_v9 = vld [vmem:[#allocation5 + $0x110] sm:$0xff]  ;;  %v255_v10 = vld [vmem:[#allocation5 + $0x108] sm:$0xff]  ;;  %v253_v11 = vld [vmem:[#allocation5 + $0xf8] sm:$0xff]  ;;  %s656_s25 = sshll.u32 %s1234_s22, 4  ;;  %s1335_s7 = scalar_lea.hbm %s1386_s3, %s844_s23  ;;  %s1337_s25 = int_to_ptr.vmem [resolvable:$true] %s656_s25 }
  0x4d   : > { %290 = vmatpush1.msra.mxu0 %v264_v4  ;;  %v252_v12 = vld [vmem:[#allocation5 + $0xf0] sm:$0xff]  ;;  %v250_v13 = vld [vmem:[#allocation5 + $0xe0] sm:$0xff]  ;;  %v269_v14 = vld [vmem:[#allocation5 + $0x178] sm:$0xff]  ;;  %v273_v3 = vshrl.u32 %v272_v2, 7  ;;  %s963_s8 = scalar_lea.vmem %s1337_s25, 6144  ;;  %s967_s10 = sshll.u32 %s1040_s9, 4  ;;  %s968_s10 = int_to_ptr.vmem [resolvable:$false] %s967_s10 }
  0x4e   : > { %291 = vmatprep.subr.mxu0 %v262_v5  ;;  %v249_v15 = vld [vmem:[#allocation5 + $0xd8] sm:$0xff]  ;;  %787 = vmatprep.subr.mxu1 %v269_v14  ;;  %v266_v16 = vld [vmem:[#allocation5 + $0x160] sm:$0xff]  ;;  %v247_v17 = vld [vmem:[#allocation5 + $0xc8] sm:$0xff]  ;;  %p964_p3 = scmp.ne.s32.totalorder %s1337_s25, %s963_s8  ;;  %s969_s11 = scalar_lea.vmem %s968_s10, 12288 }
  0x4f   : > { %292 = vmatpush1.msra.mxu0 %v261_v6  ;;  %788 = vmatpush3.msra.mxu1 %v269_v14  ;;  %v263_v18 = vld [vmem:[#allocation5 + $0x148] sm:$0xff]  ;;  %v246_v19 = vld [vmem:[#allocation5 + $0xc0] sm:$0xff]  ;;  %v244_v20 = vld [vmem:[#allocation5 + $0xb0] sm:$0xff]  ;;  %v274_v4 = vsub.s32 0, %v273_v3  ;;  %v278_v6 = vsub.s32 1, %v273_v3  ;;  %p970_p10 = scmp.lt.s32.totalorder %s1337_s25, %s968_s10  ;;  %p971_p2 = scmp.lt.s32.totalorder %s969_s11, %s963_s8 }
  0x50   : > { %293 = vmatprep.subr.mxu0 %v259_v7  ;;  %789 = vmatprep.subr.mxu1 %v266_v16  ;;  %v260_v21 = vld [vmem:[#allocation5 + $0x130] sm:$0xff]  ;;  %v243_v22 = vld [vmem:[#allocation5 + $0xa8] sm:$0xff]  ;;  %v241_v23 = vld [vmem:[#allocation5 + $0x98] sm:$0xff]  ;;  %p965_p7 = pnand %p964_p3, %p1402_p11 }
  0x51   : > { %294 = vmatpush1.msra.mxu0 %v258_v8  ;;  %790 = vmatpush3.msra.mxu1 %v266_v16  ;;  %v257_v24 = vld [vmem:[#allocation5 + $0x118] sm:$0xff]  ;;  %v240_v25 = vld [vmem:[#allocation5 + $0x90] sm:$0xff]  ;;  %v238_v26 = vld [vmem:[#allocation5 + $0x80] sm:$0xff]  ;;  %p972_p13 = por %p971_p2, %p970_p10 }
  0x52   : > { %295 = vmatprep.subr.mxu0 %v256_v9  ;;  %791 = vmatprep.subr.mxu1 %v263_v18  ;;  %v254_v27 = vld [vmem:[#allocation5 + $0x100] sm:$0xff]  ;;  %v237_v28 = vld [vmem:[#allocation5 + $0x78] sm:$0xff]  ;;  %v235_v29 = vld [vmem:[#allocation5 + $0x68] sm:$0xff]  ;;  %p966_p12 = pneg %p965_p7 }
  0x53   : > { %296 = vmatpush1.msra.mxu0 %v255_v10  ;;  %792 = vmatpush3.msra.mxu1 %v263_v18  ;;  %v251_v30 = vld [vmem:[#allocation5 + $0xe8] sm:$0xff]  ;;  %v234_v31 = vld [vmem:[#allocation5 + $0x60] sm:$0xff]  ;;  %v232_v32 = vld [vmem:[#allocation5 + $0x50] sm:$0xff] }
  0x54   : > { %297 = vmatprep.subr.mxu0 %v253_v11  ;;  %793 = vmatprep.subr.mxu1 %v260_v21  ;;  %v248_v33 = vld [vmem:[#allocation5 + $0xd0] sm:$0xff]  ;;  %v231_v34 = vld [vmem:[#allocation5 + $0x48] sm:$0xff]  ;;  %v229_v35 = vld [vmem:[#allocation5 + $0x38] sm:$0xff]  ;;  %p973_p0 = pnand %p972_p13, %p966_p12 }
  0x55   : > { %298 = vmatpush1.msra.mxu0 %v252_v12  ;;  %794 = vmatpush3.msra.mxu1 %v260_v21  ;;  %v245_v36 = vld [vmem:[#allocation5 + $0xb8] sm:$0xff]  ;;  %v228_v37 = vld [vmem:[#allocation5 + $0x30] sm:$0xff]  ;;  %v226_v38 = vld [vmem:[#allocation5 + $0x20] sm:$0xff]  ;;  %v282_v12 = vsub.s32 2, %v273_v3 }
  0x56   : > { %299 = vmatprep.subr.mxu0 %v250_v13  ;;  %795 = vmatprep.subr.mxu1 %v257_v24  ;;  %v242_v39 = vld [vmem:[#allocation5 + $0xa0] sm:$0xff]  ;;  %v225_v40 = vld [vmem:[#allocation5 + $0x18] sm:$0xff]  ;;  %v223_v41 = vld [vmem:[#allocation5 + $0x8] sm:$0xff] }
  0x57   : > { %300 = vmatpush1.msra.mxu0 %v249_v15  ;;  %796 = vmatpush3.msra.mxu1 %v257_v24  ;;  %v239_v42 = vld [vmem:[#allocation5 + $0x88] sm:$0xff]  ;;  %v222_v43 = vld [vmem:[#allocation5] sm:$0xff]  ;;  %v236_v45 = vld [vmem:[#allocation5 + $0x70] sm:$0xff] }
  0x58   : > { %301 = vmatprep.subr.mxu0 %v247_v17  ;;  %797 = vmatprep.subr.mxu1 %v254_v27  ;;  %v206_v44 = vld [vmem:[%s1183_s29] sm:$0xff]  ;;  %v233_v46 = vld [vmem:[#allocation5 + $0x58] sm:$0xff]  ;;  %v207_v47 = vld [vmem:[%s1183_s29 + $0x8] sm:$0xff] }
  0x59   : > { %302 = vmatpush1.msra.mxu0 %v246_v19  ;;  %798 = vmatpush3.msra.mxu1 %v254_v27  ;;  %v230_v48 = vld [vmem:[#allocation5 + $0x40] sm:$0xff]  ;;  %v227_v49 = vld [vmem:[#allocation5 + $0x28] sm:$0xff]  ;;  %v208_v50 = vld [vmem:[%s1183_s29 + $0x10] sm:$0xff] }
  0x5a   : > { %303 = vmatprep.subr.mxu0 %v244_v20  ;;  %799 = vmatprep.subr.mxu1 %v251_v30  ;;  %v224_v51 = vld [vmem:[#allocation5 + $0x10] sm:$0xff]  ;;  %v209_v52 = vld [vmem:[%s1183_s29 + $0x18] sm:$0xff]  ;;  %v210_v53 = vld [vmem:[%s1183_s29 + $0x20] sm:$0xff] }
  0x5b   : > { %304 = vmatpush1.msra.mxu0 %v243_v22  ;;  %800 = vmatpush3.msra.mxu1 %v251_v30  ;;  %v211_v54 = vld [vmem:[%s1183_s29 + $0x28] sm:$0xff]  ;;  %v212_v55 = vld [vmem:[%s1183_s29 + $0x30] sm:$0xff]  ;;  %v213_v56 = vld [vmem:[%s1183_s29 + $0x38] sm:$0xff] }
  0x5c   : > { %305 = vmatprep.subr.mxu0 %v241_v23  ;;  %801 = vmatprep.subr.mxu1 %v248_v33  ;;  %v214_v57 = vld [vmem:[%s1183_s29 + $0x40] sm:$0xff]  ;;  %v215_v58 = vld [vmem:[%s1183_s29 + $0x48] sm:$0xff]  ;;  %v216_v59 = vld [vmem:[%s1183_s29 + $0x50] sm:$0xff] }
  0x5d   : > { %306 = vmatpush1.msra.mxu0 %v240_v25  ;;  %802 = vmatpush3.msra.mxu1 %v248_v33  ;;  %v217_v60 = vld [vmem:[%s1183_s29 + $0x58] sm:$0xff]  ;;  %v218_v61 = vld [vmem:[%s1183_s29 + $0x60] sm:$0xff]  ;;  %v220_v62 = vld [vmem:[%s1183_s29 + $0x70] sm:$0xff] }
  0x5e   : > { %307 = vmatprep.subr.mxu0 %v238_v26  ;;  %803 = vmatprep.subr.mxu1 %v245_v36  ;;  %v219_v63 = vld [vmem:[%s1183_s29 + $0x68] sm:$0xff]  ;;  %v221_v1 = vld [vmem:[%s1183_s29 + $0x78] sm:$0xff]  ;;  %v270_v5 = vld [vmem:[%s1385_s2] sm:$0x7] }
  0x5f   : > { %308 = vmatpush1.msra.mxu0 %v237_v28  ;;  %804 = vmatpush3.msra.mxu1 %v245_v36  ;;  %v1229_v7 = vrot.slane %v270_v5, %v274_v4  ;;  %v1231_v8 = vrot.slane %v270_v5, %v278_v6  ;;  %v1242_v17 = vrot.slane %v270_v5, %v282_v12 }
  0x60   : > { %309 = vmatprep.subr.mxu0 %v235_v29  ;;  %805 = vmatprep.subr.mxu1 %v242_v39 }
  0x61   : > { %310 = vmatpush1.msra.mxu0 %v234_v31  ;;  %806 = vmatpush3.msra.mxu1 %v242_v39 }
  0x62   : > { %311 = vmatprep.subr.mxu0 %v232_v32  ;;  %807 = vmatprep.subr.mxu1 %v239_v42 }
  0x63   : > { %312 = vmatpush1.msra.mxu0 %v231_v34  ;;  %808 = vmatpush3.msra.mxu1 %v239_v42 }
  0x64   : > { %313 = vmatprep.subr.mxu0 %v229_v35  ;;  %809 = vmatprep.subr.mxu1 %v236_v45 }
  0x65   : > { %314 = vmatpush1.msra.mxu0 %v228_v37  ;;  %810 = vmatpush3.msra.mxu1 %v236_v45 }
  0x66   : > { %315 = vmatprep.subr.mxu0 %v226_v38  ;;  %811 = vmatprep.subr.mxu1 %v233_v46 }
  0x67   : > { %316 = vmatpush1.msra.mxu0 %v225_v40  ;;  %819 = vmatprep.mubr.f32.mxu1 %v206_v44 }
  0x68   : > { %317 = vmatprep.subr.mxu0 %v223_v41  ;;  %812 = vmatpush3.msra.mxu1 %v233_v46 }
  0x69   : > { %318 = vmatpush1.msra.mxu0 %v222_v43  ;;  %813 = vmatprep.subr.mxu1 %v230_v48 }
  0x6a   : > { %352 = vmatmul.mubr.f32.vlgmr.msra.gmra.mxu0 %v206_v44  ;;  %814 = vmatpush3.msra.mxu1 %v230_v48 }
  0x6b   : > { %357 = vmatprep.mubr.f32.mxu0 %v1039_v0  ;;  %815 = vmatprep.subr.mxu1 %v227_v49 }
  0x6c   : > { %816 = vmatpush3.msra.mxu1 %v227_v49 }
  0x6d   : > { %817 = vmatprep.subr.mxu1 %v224_v51 }
  0x6e   : > { %358 = vmatmul.mubr.f32.gmra.mxu0 %v207_v47  ;;  %818 = vmatpush3.msra.mxu1 %v224_v51 }
  0x6f   : > { %363 = vmatprep.mubr.f32.mxu0 %v1039_v0  ;;  %820 = vmatmul.mubr.f32.vlgmr.msra.gmra.mxu1 %v207_v47 }
  0x70   : > { %822 = vmatprep.mubr.f32.mxu1 %v208_v50 }
  0x72   : > { %364 = vmatmul.mubr.f32.gmra.mxu0 %v208_v50 }
  0x73   : > { %369 = vmatprep.mubr.f32.mxu0 %v1039_v0  ;;  %823 = vmatmul.mubr.f32.gmra.mxu1 %v209_v52 }
  0x74   : > { %825 = vmatprep.mubr.f32.mxu1 %v210_v53 }
  0x76   : > { %370 = vmatmul.mubr.f32.gmra.mxu0 %v209_v52 }
  0x77   : > { %375 = vmatprep.mubr.f32.mxu0 %v1039_v0  ;;  %826 = vmatmul.mubr.f32.gmra.mxu1 %v211_v54 }
  0x78   : > { %828 = vmatprep.mubr.f32.mxu1 %v212_v55 }
  0x7a   : > { %376 = vmatmul.mubr.f32.gmra.mxu0 %v210_v53 }
  0x7b   : > { %381 = vmatprep.mubr.f32.mxu0 %v1039_v0  ;;  %829 = vmatmul.mubr.f32.gmra.mxu1 %v213_v56 }
  0x7c   : > { %831 = vmatprep.mubr.f32.mxu1 %v214_v57 }
  0x7e   : > { %382 = vmatmul.mubr.f32.gmra.mxu0 %v211_v54 }
  0x7f   : > { %387 = vmatprep.mubr.f32.mxu0 %v1039_v0  ;;  %832 = vmatmul.mubr.f32.gmra.mxu1 %v215_v58 }
  0x80   : > { %834 = vmatprep.mubr.f32.mxu1 %v216_v59 }
  0x82   : > { %388 = vmatmul.mubr.f32.gmra.mxu0 %v212_v55 }
  0x83   : > { %393 = vmatprep.mubr.f32.mxu0 %v1039_v0  ;;  %835 = vmatmul.mubr.f32.gmra.mxu1 %v217_v60 }
  0x84   : > { %837 = vmatprep.mubr.f32.mxu1 %v218_v61 }
  0x86   : > { %394 = vmatmul.mubr.f32.gmra.mxu0 %v213_v56 }
  0x87   : > { %399 = vmatprep.mubr.f32.mxu0 %v1039_v0  ;;  %838 = vmatmul.mubr.f32.gmra.mxu1 %v219_v63 }
  0x88   : > { %840 = vmatprep.mubr.f32.mxu1 %v220_v62 }
  0x8a   : > { %400 = vmatmul.mubr.f32.gmra.mxu0 %v214_v57 }
  0x8b   : > { %405 = vmatprep.mubr.f32.mxu0 %v1039_v0  ;;  %841 = vmatmul.mubr.f32.gmra.mxu1 %v221_v1 }
  0x8e   : > { %406 = vmatmul.mubr.f32.gmra.mxu0 %v215_v58 }
  0x8f   : > { %411 = vmatprep.mubr.f32.mxu0 %v1039_v0 }
  0x92   : > { %412 = vmatmul.mubr.f32.gmra.mxu0 %v216_v59 }
  0x93   : > { %417 = vmatprep.mubr.f32.mxu0 %v1039_v0 }
  0x96   : > { %418 = vmatmul.mubr.f32.gmra.mxu0 %v217_v60 }
  0x97   : > { %423 = vmatprep.mubr.f32.mxu0 %v1039_v0 }
  0x9a   : > { %424 = vmatmul.mubr.f32.gmra.mxu0 %v218_v61 }
  0x9b   : > { %429 = vmatprep.mubr.f32.mxu0 %v1039_v0 }
  0x9e   : > { %430 = vmatmul.mubr.f32.gmra.mxu0 %v219_v63 }
  0x9f   : > { %435 = vmatprep.mubr.f32.mxu0 %v1039_v0 }
  0xa2   : > { %436 = vmatmul.mubr.f32.gmra.mxu0 %v220_v62 }
  0xa3   : > { %441 = vmatprep.mubr.f32.mxu0 %v1039_v0 }
  0xa6   : > { %442 = vmatmul.mubr.f32.gmra.mxu0 %v221_v1 }
 0x12a   : > { %v353_v9 = vpop.f32.mrf.mxu0 }
 0x12b   : > { %v354_v10 = vadd.f32 %v353_v9, %v1229_v7 }
 0x12c   : > { %v355_v11 = vpop.f32.mrf.mxu0 }
 0x12d   : > { %593 = vst [vmem:[%s1234_s22] sm:$0xff] %v354_v10  ;;  %v356_v0 = vadd.f32 %v355_v11, %v1231_v8 }
 0x12e   : > { %v359_v13 = vpop.f32.mrf.mxu0 }
 0x12f   : > { %594 = vst [vmem:[%s1234_s22 + $0x8] sm:$0xff] %v356_v0  ;;  %v360_v14 = vadd.f32 %v359_v13, %v1229_v7  ;;  %v821_v21 = vpop.f32.mrf.mxu1 }
 0x130   : > { %v361_v15 = vpop.f32.mrf.mxu0  ;;  %v520_v23 = vadd.f32 %v821_v21, %v1242_v17 }
 0x131   : > { %596 = vst [vmem:[%s1234_s22 + $0x18] sm:$0xff] %v360_v14  ;;  %v362_v16 = vadd.f32 %v361_v15, %v1231_v8  ;;  %v514_v25 = vpop.f32.mrf.mxu1 }
 0x132   : > { %v365_v18 = vpop.f32.mrf.mxu0  ;;  %598 = vst [vmem:[%s1234_s22 + $0x28] sm:$0xff] %v520_v23  ;;  %v515_v27 = vadd.f32 %v514_v25, %v1242_v17 }
 0x133   : > { %597 = vst [vmem:[%s1234_s22 + $0x20] sm:$0xff] %v362_v16  ;;  %v366_v19 = vadd.f32 %v365_v18, %v1229_v7  ;;  %v824_v29 = vpop.f32.mrf.mxu1 }
 0x134   : > { %v367_v20 = vpop.f32.mrf.mxu0  ;;  %595 = vst [vmem:[%s1234_s22 + $0x10] sm:$0xff] %v515_v27  ;;  %v530_v31 = vadd.f32 %v824_v29, %v1242_v17 }
 0x135   : > { %599 = vst [vmem:[%s1234_s22 + $0x30] sm:$0xff] %v366_v19  ;;  %v368_v22 = vadd.f32 %v367_v20, %v1231_v8  ;;  %v524_v33 = vpop.f32.mrf.mxu1 }
 0x136   : > { %v371_v24 = vpop.f32.mrf.mxu0  ;;  %604 = vst [vmem:[%s1234_s22 + $0x58] sm:$0xff] %v530_v31  ;;  %v525_v35 = vadd.f32 %v524_v33, %v1242_v17 }
 0x137   : > { %600 = vst [vmem:[%s1234_s22 + $0x38] sm:$0xff] %v368_v22  ;;  %v372_v26 = vadd.f32 %v371_v24, %v1229_v7  ;;  %v827_v37 = vpop.f32.mrf.mxu1 }
 0x138   : > { %v373_v28 = vpop.f32.mrf.mxu0  ;;  %601 = vst [vmem:[%s1234_s22 + $0x40] sm:$0xff] %v525_v35  ;;  %v540_v39 = vadd.f32 %v827_v37, %v1242_v17 }
 0x139   : > { %602 = vst [vmem:[%s1234_s22 + $0x48] sm:$0xff] %v372_v26  ;;  %v374_v30 = vadd.f32 %v373_v28, %v1231_v8  ;;  %v534_v41 = vpop.f32.mrf.mxu1 }
 0x13a   : > { %v377_v32 = vpop.f32.mrf.mxu0  ;;  %610 = vst [vmem:[%s1234_s22 + $0x88] sm:$0xff] %v540_v39  ;;  %v535_v43 = vadd.f32 %v534_v41, %v1242_v17 }
 0x13b   : > { %603 = vst [vmem:[%s1234_s22 + $0x50] sm:$0xff] %v374_v30  ;;  %v378_v34 = vadd.f32 %v377_v32, %v1229_v7  ;;  %v830_v45 = vpop.f32.mrf.mxu1 }
 0x13c   : > { %v379_v36 = vpop.f32.mrf.mxu0  ;;  %607 = vst [vmem:[%s1234_s22 + $0x70] sm:$0xff] %v535_v43  ;;  %v550_v47 = vadd.f32 %v830_v45, %v1242_v17 }
 0x13d   : > { %605 = vst [vmem:[%s1234_s22 + $0x60] sm:$0xff] %v378_v34  ;;  %v380_v38 = vadd.f32 %v379_v36, %v1231_v8  ;;  %v544_v49 = vpop.f32.mrf.mxu1 }
 0x13e   : > { %v383_v40 = vpop.f32.mrf.mxu0  ;;  %616 = vst [vmem:[%s1234_s22 + $0xb8] sm:$0xff] %v550_v47  ;;  %v545_v51 = vadd.f32 %v544_v49, %v1242_v17 }
 0x13f   : > { %606 = vst [vmem:[%s1234_s22 + $0x68] sm:$0xff] %v380_v38  ;;  %v384_v42 = vadd.f32 %v383_v40, %v1229_v7  ;;  %v833_v53 = vpop.f32.mrf.mxu1 }
 0x140   : > { %v385_v44 = vpop.f32.mrf.mxu0  ;;  %613 = vst [vmem:[%s1234_s22 + $0xa0] sm:$0xff] %v545_v51  ;;  %v560_v55 = vadd.f32 %v833_v53, %v1242_v17 }
 0x141   : > { %608 = vst [vmem:[%s1234_s22 + $0x78] sm:$0xff] %v384_v42  ;;  %v386_v46 = vadd.f32 %v385_v44, %v1231_v8  ;;  %v554_v57 = vpop.f32.mrf.mxu1 }
 0x142   : > { %v389_v48 = vpop.f32.mrf.mxu0  ;;  %622 = vst [vmem:[%s1234_s22 + $0xe8] sm:$0xff] %v560_v55  ;;  %v555_v59 = vadd.f32 %v554_v57, %v1242_v17 }
 0x143   : > { %609 = vst [vmem:[%s1234_s22 + $0x80] sm:$0xff] %v386_v46  ;;  %v390_v50 = vadd.f32 %v389_v48, %v1229_v7  ;;  %v836_v61 = vpop.f32.mrf.mxu1 }
 0x144   : > { %v391_v52 = vpop.f32.mrf.mxu0  ;;  %619 = vst [vmem:[%s1234_s22 + $0xd0] sm:$0xff] %v555_v59  ;;  %v570_v63 = vadd.f32 %v836_v61, %v1242_v17 }
 0x145   : > { %611 = vst [vmem:[%s1234_s22 + $0x90] sm:$0xff] %v390_v50  ;;  %v392_v54 = vadd.f32 %v391_v52, %v1231_v8  ;;  %v564_v2 = vpop.f32.mrf.mxu1 }
 0x146   : > { %v395_v56 = vpop.f32.mrf.mxu0  ;;  %628 = vst [vmem:[%s1234_s22 + $0x118] sm:$0xff] %v570_v63  ;;  %v565_v4 = vadd.f32 %v564_v2, %v1242_v17 }
 0x147   : > { %612 = vst [vmem:[%s1234_s22 + $0x98] sm:$0xff] %v392_v54  ;;  %v396_v58 = vadd.f32 %v395_v56, %v1229_v7  ;;  %v839_v6 = vpop.f32.mrf.mxu1 }
 0x148   : > { %v397_v60 = vpop.f32.mrf.mxu0  ;;  %625 = vst [vmem:[%s1234_s22 + $0x100] sm:$0xff] %v565_v4  ;;  %v580_v10 = vadd.f32 %v839_v6, %v1242_v17 }
 0x149   : > { %614 = vst [vmem:[%s1234_s22 + $0xa8] sm:$0xff] %v396_v58  ;;  %v398_v62 = vadd.f32 %v397_v60, %v1231_v8  ;;  %v574_v0 = vpop.f32.mrf.mxu1 }
 0x14a   : > { %v401_v1 = vpop.f32.mrf.mxu0  ;;  %634 = vst [vmem:[%s1234_s22 + $0x148] sm:$0xff] %v580_v10  ;;  %v575_v13 = vadd.f32 %v574_v0, %v1242_v17 }
 0x14b   : > { %615 = vst [vmem:[%s1234_s22 + $0xb0] sm:$0xff] %v398_v62  ;;  %v402_v3 = vadd.f32 %v401_v1, %v1229_v7  ;;  %v842_v15 = vpop.f32.mrf.mxu1 }
 0x14c   : > { %v403_v5 = vpop.f32.mrf.mxu0  ;;  %631 = vst [vmem:[%s1234_s22 + $0x130] sm:$0xff] %v575_v13  ;;  %v590_v18 = vadd.f32 %v842_v15, %v1242_v17 }
 0x14d   : > { %617 = vst [vmem:[%s1234_s22 + $0xc0] sm:$0xff] %v402_v3  ;;  %v404_v9 = vadd.f32 %v403_v5, %v1231_v8  ;;  %v584_v20 = vpop.f32.mrf.mxu1 }
 0x14e   : > { %v407_v11 = vpop.f32.mrf.mxu0  ;;  %640 = vst [vmem:[%s1234_s22 + $0x178] sm:$0xff] %v590_v18  ;;  %v585_v22 = vadd.f32 %v584_v20, %v1242_v17 }
 0x14f   : > { %618 = vst [vmem:[%s1234_s22 + $0xc8] sm:$0xff] %v404_v9  ;;  %v408_v12 = vadd.f32 %v407_v11, %v1229_v7 }
 0x150   : > { %v409_v14 = vpop.f32.mrf.mxu0  ;;  %637 = vst [vmem:[%s1234_s22 + $0x160] sm:$0xff] %v585_v22 }
 0x151   : > { %620 = vst [vmem:[%s1234_s22 + $0xd8] sm:$0xff] %v408_v12  ;;  %v410_v16 = vadd.f32 %v409_v14, %v1231_v8 }
 0x152   : > { %v413_v19 = vpop.f32.mrf.mxu0 }
 0x153   : > { %621 = vst [vmem:[%s1234_s22 + $0xe0] sm:$0xff] %v410_v16  ;;  %v414_v21 = vadd.f32 %v413_v19, %v1229_v7 }
 0x154   : > { %v415_v23 = vpop.f32.mrf.mxu0 }
 0x155   : > { %623 = vst [vmem:[%s1234_s22 + $0xf0] sm:$0xff] %v414_v21  ;;  %v416_v24 = vadd.f32 %v415_v23, %v1231_v8 }
 0x156   : > { %v419_v25 = vpop.f32.mrf.mxu0 }
 0x157   : > { %624 = vst [vmem:[%s1234_s22 + $0xf8] sm:$0xff] %v416_v24  ;;  %v420_v26 = vadd.f32 %v419_v25, %v1229_v7 }
 0x158   : > { %v421_v27 = vpop.f32.mrf.mxu0 }
 0x159   : > { %626 = vst [vmem:[%s1234_s22 + $0x108] sm:$0xff] %v420_v26  ;;  %v422_v28 = vadd.f32 %v421_v27, %v1231_v8 }
 0x15a   : > { %v425_v29 = vpop.f32.mrf.mxu0 }
 0x15b   : > { %627 = vst [vmem:[%s1234_s22 + $0x110] sm:$0xff] %v422_v28  ;;  %v426_v17 = vadd.f32 %v425_v29, %v1229_v7 }
 0x15c   : > { %v427_v30 = vpop.f32.mrf.mxu0 }
 0x15d   : > { %629 = vst [vmem:[%s1234_s22 + $0x120] sm:$0xff] %v426_v17  ;;  %v428_v31 = vadd.f32 %v427_v30, %v1231_v8 }
 0x15e   : > { %v431_v32 = vpop.f32.mrf.mxu0 }
 0x15f   : > { %630 = vst [vmem:[%s1234_s22 + $0x128] sm:$0xff] %v428_v31  ;;  %v432_v33 = vadd.f32 %v431_v32, %v1229_v7 }
 0x160   : > { %v433_v34 = vpop.f32.mrf.mxu0 }
 0x161   : > { %632 = vst [vmem:[%s1234_s22 + $0x138] sm:$0xff] %v432_v33  ;;  %v434_v35 = vadd.f32 %v433_v34, %v1231_v8 }
 0x162   : > { %v437_v36 = vpop.f32.mrf.mxu0 }
 0x163   : > { %633 = vst [vmem:[%s1234_s22 + $0x140] sm:$0xff] %v434_v35  ;;  %v438_v37 = vadd.f32 %v437_v36, %v1229_v7 }
 0x164   : > { %v439_v38 = vpop.f32.mrf.mxu0 }
 0x165   : > { %635 = vst [vmem:[%s1234_s22 + $0x150] sm:$0xff] %v438_v37  ;;  %v440_v39 = vadd.f32 %v439_v38, %v1231_v8 }
 0x166   : > { %v443_v40 = vpop.f32.mrf.mxu0 }
 0x167   : > { %636 = vst [vmem:[%s1234_s22 + $0x158] sm:$0xff] %v440_v39  ;;  %v444_v41 = vadd.f32 %v443_v40, %v1229_v7 }
 0x168   : > { %v445_v42 = vpop.f32.mrf.mxu0 }
 0x169   : > { %638 = vst [vmem:[%s1234_s22 + $0x168] sm:$0xff] %v444_v41  ;;  %v446_v43 = vadd.f32 %v445_v42, %v1231_v8 }
 0x16b   : > { %639 = vst [vmem:[%s1234_s22 + $0x170] sm:$0xff] %v446_v43 }
 0x16c   : > { %976 = shalt.err (!%p973_p0)
}
 0x16d   : > { %s977_s21 = scalar_lea.hbm %s1335_s7, 6144  ;;  %s981_s29 = scalar_lea.hbm %s1386_s3, 12288 }
 0x16e   : > { %p978_p5 = scmp.ne.s32.totalorder %s1335_s7, %s977_s21  ;;  %p982_p4 = scmp.lt.s32.totalorder %s1335_s7, %s1386_s3 }
 0x16f   : > { %p983_p6 = scmp.lt.s32.totalorder %s981_s29, %s977_s21 }
 0x170   : > { %p979_p9 = pnand %p978_p5, %p1402_p11 }
 0x171   : > { %p984_p8 = por %p983_p6, %p982_p4 }
 0x172   : > { %p980_p1 = pneg %p979_p9 }
 0x174   : > { %p985_p3 = pnand %p984_p8, %p980_p1 }
 0x176   : > { %988 = shalt.err (!%p985_p3)
}
 0x177   : > { %s1041_s17 = smov 384   ;;  %s1042_s22 = smov 24  }
 0x178   : > { %851 = dma.vmem_to_hbm [thread:$0]  (%p1402_p11), %s1337_s25, 6144, %s1335_s7, %s642_s16, %s1041_s17, %s1041_s17, %s1042_s22  }
 0x179 PF: > { %s671_s23 = sand.u32 1, %s1019_s12   ;;  %p1403_p7 = scmp.ne.s32.totalorder %s1392_s19, 0 }
 0x17a   : > { %p1404_p12 = scmp.ge.s32.totalorder %s1031_s15, 2  ;;  %s672_s30 = scalar_lea.sflag [#allocation4], %s671_s23 }
 0x17c   : > { %p862_p10 = pnand %p1404_p12, %p1403_p7 }
 0x17e   : > { %p863_p2 = pneg %p862_p10 }
 0x180   : > { %1014 = dma.done.wait (%p863_p2), %s672_s30, 6144  }
 0x181   : > { %1016 = vsyncadd (%p863_p2), %s672_s30, 4294961152  ;;  %p17_p13 = scmp.ge.s32.totalorder %s1117_s24, 4   ;;  %s1405_s12 = smov %s1023_s13 }
 0x182   : > { %s1406_s13 = smov %s1027_s14  ;;  %s1407_s14 = smov %s1134_s5 }
 0x183   : > { %s1408_s15 = smov %s1117_s24  ;;  %19 = sbr.rel (!%p17_p13) target bundleno = 6 (0x6), region = 81 }
 0x188   :  { %677 = vsyncpa [#allocation3], 1 }
 0x189   :  { %679 = vsyncpa [#allocation3 + $0x1], 1 }
 0x18a   :  { %680 = vsyncpa [#allocation6], 1 }
 0x18b   :  { %681 = vsyncpa [#allocation4], 1 }
 0x18c   :  { %683 = vsyncpa [#allocation4 + $0x1], 1 }

</bundles_post_ra>
